<compile_context>
chip_gen: v7x
topology: tpu7x:2x2x1
jax: 0.10.0
libtpu: 0.0.40
codegen_flags: <defaults>
</compile_context>

<pallas_src>
import functools

import jax
import jax.numpy as jnp
from jax.experimental import pallas as pl
from jax.experimental.pallas import tpu as pltpu


def _inter_att_kernel(emb_ref, wt_ref, b_ref, att_ref, out_ref):
    B, V, N, D = emb_ref.shape           # B = graphs per grid step

    x = emb_ref[...]                     # [B, V, N, D] f32 (original embeds, single copy)
    wt = wt_ref[...]                     # [D, D]       bf16 pre-transposed fc weight
    b = b_ref[...]                       # [1, D]       f32
    att = att_ref[...]                   # [1, D]       f32

    # fc + tanh for all graphs & views in one MXU matmul (bf16 operands, f32 acc).
    # The leading-dim merge is tile-aligned because N is a multiple of 8.
    x2 = x.reshape(B * V * N, D).astype(jnp.bfloat16)
    h = jnp.tanh(jnp.dot(x2, wt, preferred_element_type=jnp.float32) + b)   # [B*V*N, D] f32

    # mean-over-nodes and the att dot commute: sum nodes first, post-scale by 1/N.
    sp_sum = jnp.sum(h.reshape(B, V, N, D), axis=2)                         # [B, V, D]
    # VPU multiply + lane reduce (cheaper than a second, emulated f32 MXU matvec).
    scores = jnp.sum(sp_sum * att, axis=-1) * (1.0 / N)                     # [B, V]

    # softmax over views, per graph (f32 throughout; EUP approx reciprocal is
    # ~2^-12 relative error, well inside the bf16-matmul tolerance).
    m = jnp.max(scores, axis=1, keepdims=True)
    e = jnp.exp(scores - m)
    beta = e * pl.reciprocal(jnp.sum(e, axis=1, keepdims=True), approx=True)  # [B, V]

    # weighted sum of the original (untransformed) embeddings.
    out_ref[...] = jnp.sum(beta[:, :, None, None] * x, axis=1).astype(out_ref.dtype)


def prepare_params(w, b, att):
    """One-time parameter staging (constants across forwards): do NOT redo per call."""
    D = w.shape[0]
    wt = w.T.astype(jnp.bfloat16)            # pre-transposed: x @ wt == x @ W^T
    bf = b.reshape(1, D).astype(jnp.float32)
    attr = att.reshape(1, D).astype(jnp.float32)
    return wt, bf, attr


@functools.partial(jax.jit, static_argnames=("graphs_per_step",))
def inter_att_forward_batched(embeds, wt, bf, attr, *, graphs_per_step=1):
    """embeds: [G, V, N, D] f32 -> [G, N, D] f32. G graphs batched behind one grid."""
    G, V, N, D = embeds.shape
    assert G % graphs_per_step == 0, "G must be divisible by graphs_per_step"
    # N multiple of 8 keeps the in-kernel (B*V*N, D) reshape tile-aligned (f32 sublane);
    # other N are still correct but incur a silent VMEM relayout.
    gb = graphs_per_step

    return pl.pallas_call(
        _inter_att_kernel,
        out_shape=jax.ShapeDtypeStruct((G, N, D), jnp.float32),
        grid=(G // gb,),
        in_specs=[
            pl.BlockSpec((gb, V, N, D), lambda g: (g, 0, 0, 0)),
            # shared parameters: constant block index -> resident in VMEM across steps
            pl.BlockSpec((D, D), lambda g: (0, 0)),
            pl.BlockSpec((1, D), lambda g: (0, 0)),
            pl.BlockSpec((1, D), lambda g: (0, 0)),
        ],
        out_specs=pl.BlockSpec((gb, N, D), lambda g: (g, 0, 0)),
        compiler_params=pltpu.CompilerParams(
            dimension_semantics=("parallel",)),   # shards graph axis across v7x's 2 TCs
    )(embeds.astype(jnp.float32), wt, bf, attr)


def inter_att_forward(embeds, w, b, att):
    """Single-graph forward matching the PyTorch module: embeds [V, N, D] -> [N, D]."""
    wt, bf, attr = prepare_params(w, b, att)   # for repeated calls, stage once outside
    out = inter_att_forward_batched(embeds[None], wt, bf, attr, graphs_per_step=1)
    return out[0].astype(embeds.dtype)


def _xavier_normal(key, shape, gain):
    fan_out, fan_in = shape
    std = gain * jnp.sqrt(2.0 / (fan_in + fan_out))
    return std * jax.random.normal(key, shape, dtype=jnp.float32)


def _reference(embeds, w, b, att):
    # pure-JAX f32 reference mirroring the PyTorch forward (one graph)
    h = jnp.tanh(jnp.einsum('vnd,ed->vne', embeds, w) + b[0])
    sp = h.mean(axis=1)                       # [V, D]
    scores = (sp * att[0]).sum(axis=-1)       # [V]
    beta = jax.nn.softmax(scores, axis=0)
    return (beta[:, None, None] * embeds).sum(axis=0)


if __name__ == "__main__":
    key = jax.random.PRNGKey(0)
    V, N, D = 3, 16, 32   # num_views, num_nodes, hidden_dim
    G = 8                 # number of graphs batched behind the grid

    k_emb, k_w, k_b, k_att = jax.random.split(key, 4)
    embeds = jax.random.normal(k_emb, (G, V, N, D), dtype=jnp.float32)

    # Deterministic parameter init (matching __init__ shapes; xavier_normal, gain=1.414)
    w = _xavier_normal(k_w, (D, D), gain=1.414)                      # fc.weight [out, in]
    bound = 1.0 / jnp.sqrt(D)
    b = jax.random.uniform(k_b, (1, D), minval=-bound, maxval=bound,
                           dtype=jnp.float32)                        # fc.bias
    att = _xavier_normal(k_att, (1, D), gain=1.414)                  # att parameter
    # TODO(synk): attn_drop (Dropout on `att`) is identity in eval mode; training-mode
    # dropout is intentionally not applied here.

    # One-time parameter staging (cached across forwards).
    wt, bf, attr = prepare_params(w, b, att)

    # Batched path: 8 graphs, 4 graphs per grid step, graph axis "parallel".
    out_b = jax.block_until_ready(
        inter_att_forward_batched(embeds, wt, bf, attr, graphs_per_step=4))

    # Single-graph path (original module semantics).
    out_1 = jax.block_until_ready(inter_att_forward(embeds[0], w, b, att))

    ref_b = jax.vmap(_reference, in_axes=(0, None, None, None))(embeds, w, b, att)
    assert out_b.shape == (G, N, D)
    assert out_1.shape == (N, D)
    # Tolerance reflects the intentional bf16-operand matmul (f32 accumulate);
    # the score/softmax path stays f32 post-accumulate.
    assert jnp.allclose(out_b, ref_b, rtol=2e-2, atol=3e-2), "batched mismatch vs reference"
    assert jnp.allclose(out_1, ref_b[0], rtol=2e-2, atol=3e-2), "single-graph mismatch vs reference"

    print("KERNEL_OK")
</pallas_src>

<mosaic_0001>
module attributes {stable_mosaic.version = 11 : i64} {
  func.func @_inter_att_kernel(%arg0: i32, %arg1: memref<4x3x16x32xf32, #tpu.memory_space<vmem>>, %arg2: memref<32x32xbf16, #tpu.memory_space<vmem>>, %arg3: memref<1x32xf32, #tpu.memory_space<vmem>>, %arg4: memref<1x32xf32, #tpu.memory_space<vmem>>, %arg5: memref<4x16x32xf32, #tpu.memory_space<vmem>>) attributes {dimension_semantics = [#tpu.dimension_semantics<parallel>], iteration_bounds = array<i64: 2>, scalar_prefetch = 0 : i64, scratch_operands = 0 : i64, tpu.core_type = #tpu.core_type<tc>, window_params = [{transform_indices = @transform_0, window_bounds = array<i64: 4, 3, 16, 32>}, {pipeline_mode = #tpu.pipeline_mode<synchronous>, transform_indices = @transform_1, window_bounds = array<i64: 32, 32>}, {pipeline_mode = #tpu.pipeline_mode<synchronous>, transform_indices = @transform_2, window_bounds = array<i64: 1, 32>}, {pipeline_mode = #tpu.pipeline_mode<synchronous>, transform_indices = @transform_3, window_bounds = array<i64: 1, 32>}, {transform_indices = @transform_4, window_bounds = array<i64: 4, 16, 32>}]} {
    %c0 = arith.constant 0 : index
    %c0_0 = arith.constant 0 : index
    %c0_1 = arith.constant 0 : index
    %c0_2 = arith.constant 0 : index
    %0 = vector.load %arg1[%c0, %c0_0, %c0_1, %c0_2] : memref<4x3x16x32xf32, #tpu.memory_space<vmem>>, vector<4x3x16x32xf32>
    %c0_3 = arith.constant 0 : index
    %c0_4 = arith.constant 0 : index
    %1 = vector.load %arg2[%c0_3, %c0_4] : memref<32x32xbf16, #tpu.memory_space<vmem>>, vector<32x32xbf16>
    %c0_5 = arith.constant 0 : index
    %c0_6 = arith.constant 0 : index
    %2 = vector.load %arg3[%c0_5, %c0_6] : memref<1x32xf32, #tpu.memory_space<vmem>>, vector<1x32xf32>
    %c0_7 = arith.constant 0 : index
    %c0_8 = arith.constant 0 : index
    %3 = vector.load %arg4[%c0_7, %c0_8] : memref<1x32xf32, #tpu.memory_space<vmem>>, vector<1x32xf32>
    %4 = vector.shape_cast %0 : vector<4x3x16x32xf32> to vector<192x32xf32>
    %5 = arith.truncf %4 : vector<192x32xf32> to vector<192x32xbf16>
    %cst = arith.constant dense<0.000000e+00> : vector<192x32xf32>
    %6 = tpu.matmul %5, %1, %cst {dimension_numbers = #tpu.dot_dimension_numbers<[1], [0], [0], [1], [0, 0, 1, 1], [], []>} : vector<192x32xbf16>, vector<32x32xbf16>, vector<192x32xf32> -> vector<192x32xf32>
    %7 = vector.broadcast %2 : vector<1x32xf32> to vector<192x32xf32>
    %8 = arith.addf %6, %7 : vector<192x32xf32>
    %9 = math.tanh %8 : vector<192x32xf32>
    %10 = vector.shape_cast %9 : vector<192x32xf32> to vector<4x3x16x32xf32>
    %cst_9 = arith.constant dense<0.000000e+00> : vector<4x3x32xf32>
    %11 = vector.multi_reduction <add>, %10, %cst_9 [2] : vector<4x3x16x32xf32> to vector<4x3x32xf32>
    %12 = vector.shape_cast %3 : vector<1x32xf32> to vector<1x1x32xf32>
    %13 = vector.broadcast %12 : vector<1x1x32xf32> to vector<4x3x32xf32>
    %14 = arith.mulf %11, %13 : vector<4x3x32xf32>
    %cst_10 = arith.constant dense<0.000000e+00> : vector<4x3xf32>
    %15 = vector.multi_reduction <add>, %14, %cst_10 [2] : vector<4x3x32xf32> to vector<4x3xf32>
    %cst_11 = arith.constant 6.250000e-02 : f32
    %16 = vector.broadcast %cst_11 : f32 to vector<4x3xf32>
    %17 = arith.mulf %15, %16 : vector<4x3xf32>
    %cst_12 = arith.constant dense<0xFF800000> : vector<4xf32>
    %18 = vector.multi_reduction <maximumf>, %17, %cst_12 [1] : vector<4x3xf32> to vector<4xf32>
    %19 = vector.shape_cast %18 : vector<4xf32> to vector<4x1xf32>
    %20 = vector.broadcast %19 : vector<4x1xf32> to vector<4x3xf32>
    %21 = arith.subf %17, %20 : vector<4x3xf32>
    %22 = math.exp %21 : vector<4x3xf32>
    %cst_13 = arith.constant dense<0.000000e+00> : vector<4xf32>
    %23 = vector.multi_reduction <add>, %22, %cst_13 [1] : vector<4x3xf32> to vector<4xf32>
    %24 = vector.shape_cast %23 : vector<4xf32> to vector<4x1xf32>
    %25 = tpu.reciprocal %24 {approx = true} : vector<4x1xf32> -> vector<4x1xf32>
    %26 = vector.broadcast %25 : vector<4x1xf32> to vector<4x3xf32>
    %27 = arith.mulf %22, %26 : vector<4x3xf32>
    %28 = vector.shape_cast %27 : vector<4x3xf32> to vector<4x3x1x1xf32>
    %29 = vector.broadcast %28 : vector<4x3x1x1xf32> to vector<4x3x16x32xf32>
    %30 = arith.mulf %29, %0 : vector<4x3x16x32xf32>
    %cst_14 = arith.constant dense<0.000000e+00> : vector<4x16x32xf32>
    %31 = vector.multi_reduction <add>, %30, %cst_14 [1] : vector<4x3x16x32xf32> to vector<4x16x32xf32>
    %c0_15 = arith.constant 0 : index
    %c0_16 = arith.constant 0 : index
    %c0_17 = arith.constant 0 : index
    %32 = vector.load %arg5[%c0_15, %c0_16, %c0_17] : memref<4x16x32xf32, #tpu.memory_space<vmem>>, vector<4x16x32xf32>
    tpu.vector_store %arg5[%c0_15, %c0_16, %c0_17], %31 {strides = array<i32>} : memref<4x16x32xf32, #tpu.memory_space<vmem>>, vector<4x16x32xf32>,
    return
  }
  func.func @transform_0(%arg0: i32) -> (i32, i32, i32, i32) {
    %c0_i32 = arith.constant 0 : i32
    %c0_i32_0 = arith.constant 0 : i32
    %c0_i32_1 = arith.constant 0 : i32
    %c0_i32_2 = arith.constant 0 : i32
    return %arg0, %c0_i32, %c0_i32_0, %c0_i32_1 : i32, i32, i32, i32
  }
  func.func @transform_1(%arg0: i32) -> (i32, i32) {
    %c0_i32 = arith.constant 0 : i32
    %c0_i32_0 = arith.constant 0 : i32
    %c0_i32_1 = arith.constant 0 : i32
    return %c0_i32, %c0_i32_0 : i32, i32
  }
  func.func @transform_2(%arg0: i32) -> (i32, i32) {
    %c0_i32 = arith.constant 0 : i32
    %c0_i32_0 = arith.constant 0 : i32
    %c0_i32_1 = arith.constant 0 : i32
    return %c0_i32, %c0_i32_0 : i32, i32
  }
  func.func @transform_3(%arg0: i32) -> (i32, i32) {
    %c0_i32 = arith.constant 0 : i32
    %c0_i32_0 = arith.constant 0 : i32
    %c0_i32_1 = arith.constant 0 : i32
    return %c0_i32, %c0_i32_0 : i32, i32
  }
  func.func @transform_4(%arg0: i32) -> (i32, i32, i32) {
    %c0_i32 = arith.constant 0 : i32
    %c0_i32_0 = arith.constant 0 : i32
    %c0_i32_1 = arith.constant 0 : i32
    return %arg0, %c0_i32, %c0_i32_0 : i32, i32, i32
  }
}

</mosaic_0001>

<bundles_post_ra>
// kernel: inter_att_forward_batched.1
= control target key start
LH: loop header
LB: loop body
LE: loop exit
PB: predicated region body
PF: predicated region fallthrough
CT: control target
= control target key end

     0   :  { %9 = vsyncpa [#allocation3], 0  ;;  %s2026_s0 = inlined_call_operand.hbm [shape: f32[8,3,16,32], index: 0, kind: input, shape index: {}]   ;;  %s2027_s1 = inlined_call_operand.hbm [shape: bf16[32,32], index: 1, kind: input, shape index: {}]   ;;  %s2028_s2 = inlined_call_operand.vmem [shape: f32[1,32], index: 2, kind: input, shape index: {}]   ;;  %s2029_s3 = inlined_call_operand.vmem [shape: f32[1,32], index: 3, kind: input, shape index: {}]   ;;  %s2030_s4 = inlined_call_operand.hbm [shape: f32[8,16,32], index: 4, kind: output, shape index: {}]  }
   0x1   :  { %11 = vsyncpa [#allocation3 + $0x1], 0 }
   0x2   :  { %12 = vsyncpa [#allocation6], 0 }
   0x3   :  { %13 = vsyncpa [#allocation4], 0 }
   0x4   :  { %15 = vsyncpa [#allocation4 + $0x1], 0  ;;  %s1529_s15 = smov 0   ;;  %s1531_s16 = smov 0  }
   0x5   :  { %s1533_s17 = smov 0   ;;  %s1535_s18 = smov 0  }
   0x6 LB: > { %s1550_s19 = sadd.s32 4294967295, %s1491_s18   ;;  %s1153_s20 = sadd.s32 4294967294, %s1491_s18   ;;  %s1491_s18 = sphi %s1535_s18, %s2050_s18   ;;  %s1487_s17 = sphi %s1533_s17, %s2049_s17   ;;  %s1483_s16 = sphi %s1531_s16, %s2048_s16   ;;  %s1479_s15 = sphi %s1529_s15, %s2047_s15  }
   0x7   : > { %p41_p0 = scmp.ne.s32.totalorder %s1483_s16, %s1479_s15  ;;  %p2031_p1 = scmp.eq.s32.totalorder %s1550_s19, 0 }
   0x8   : > { %p134_p3 = scmp.eq.s32.totalorder %s1153_s20, 1  ;;  %p1154_p5 = scmp.ge.s32.totalorder %s1491_s18, 1 }
   0x9   : > { %p1559_p4 = por %p2031_p1, %p41_p0  ;;  %p141_p7 = scmp.lt.s32.totalorder %s1491_s18, 3 }
   0xa   : > { %p1564_p6 = por %p134_p3, %p41_p0  ;;  %s1493_s24 = smov [#allocation5]  }
   0xb   : > { %s2034_s21 = scalar_select %p1559_p4, 1, 0 }
   0xc   : > { %s2035_s22 = scalar_select %p1564_p6, 1, 0 }
   0xd   : > { %p1569_p8 = pnand %p1154_p5, %p141_p7  ;;  %s153_s25 = sshll.u32 %s1493_s24, 4  ;;  %s1573_s25 = int_to_ptr.vmem [resolvable:$true] %s153_s25 }
   0xe   : > { %s1585_s27 = sadd.s32 1, %s1491_s18   ;;  %s28_s28 = sadd.s32 1, %s1487_s17 }
   0xf   : > { %s2036_s23 = scalar_select %p1569_p8, 1, 0 }
  0x10   : > { %p1244_p9 = pneg %p1569_p8  ;;  %s25_s29 = ssub.s32 %s1491_s18, %s1585_s27 }
  0x11   : > { %s1363_s6 = scalar_lea.hbm %s2027_s1, 256 }
  0x12   : > { %p1580_p11 = pnand %p1244_p9, %p2031_p1  ;;  %p1364_p12 = scmp.ne.s32.totalorder %s2027_s1, %s1363_s6 }
  0x13   : > { %p1370_p5 = scmp.lt.u32.totalorder %s1363_s6, %s2027_s1 }
  0x14   : > { %p1365_p13 = pneg %p1580_p11 }
  0x16   : > { %p1366_p0 = pnand %p1365_p13, %p1364_p12 }
  0x18   : > { %p1367_p3 = pneg %p1366_p0 }
  0x1a   : > { %p1372_p7 = pnand %p1370_p5, %p1367_p3 }
  0x1c   : > { %1375 = shalt.err (!%p1372_p7)
}
  0x1d   : > { %s1376_s11 = scalar_lea.vmem %s1573_s25, 256  ;;  %p1384_p2 = scmp.lt.s32.totalorder %s1573_s25, %s1573_s25 }
  0x1e   : > { %p1377_p9 = scmp.ne.s32.totalorder %s1573_s25, %s1376_s11  ;;  %p1385_p6 = scmp.lt.s32.totalorder %s1376_s11, %s1376_s11 }
  0x20   : > { %p1379_p10 = pnand %p1377_p9, %p1365_p13  ;;  %p1386_p4 = por %p1385_p6, %p1384_p2 }
  0x22   : > { %p1380_p1 = pneg %p1379_p10 }
  0x24   : > { %p1387_p8 = pnand %p1386_p4, %p1380_p1 }
  0x26   : > { %1390 = shalt.err (!%p1387_p8)
}
  0x27   : > { %s1494_s12 = smov 64   ;;  %s1495_s13 = smov 4  }
  0x28   : > { %1247 = dma.hbm_to_vmem [thread:$0]  (!%p1580_p11), %s2027_s1, 256, %s1573_s25, [#allocation6], %s1494_s12, %s1494_s12, %s1495_s13  }
  0x29   : > { %p26_p2 = scmp.eq.s32.totalorder %s25_s29, 0  ;;  %p35_p1 = scmp.ne.s32.totalorder %s1487_s17, %s1483_s16 }
  0x2a   : > { %p36_p4 = scmp.eq.s32.totalorder %s1491_s18, 0  ;;  %p1257_p6 = scmp.lt.s32.totalorder %s1491_s18, 2 }
  0x2b   : > { %s1616_s24 = scalar_select %p26_p2, %s1487_s17, %s28_s28  }
  0x2c   : > { %p37_p8 = por %p36_p4, %p35_p1  ;;  %p2038_p10 = scmp.eq.s32.totalorder %s1550_s19, 1 }
  0x2d   : > { %s173_s5 = sand.u32 1, %s1487_s17   ;;  %s1234_s6 = smul.u32 3072, %s1491_s18 }
  0x2e   : > { %p1620_p12 = por %p2038_p10, %p35_p1  ;;  %s1233_s7 = smul.u32 192, %s173_s5 }
  0x2f   : > { %s1629_s9 = scalar_lea.hbm %s2026_s0, %s1234_s6  ;;  %p1631_p11 = pnand %p1257_p6, %p37_p8 }
  0x30   : > { %s177_s28 = scalar_lea.vmem [#allocation2], %s1233_s7  ;;  %s1637_s10 = scalar_lea.sflag [#allocation3], %s173_s5 }
  0x31   : > { %s185_s29 = sshll.u32 %s177_s28, 4  ;;  %s1391_s11 = scalar_lea.hbm %s1629_s9, 3072  ;;  %s1635_s29 = int_to_ptr.vmem [resolvable:$true] %s185_s29 }
  0x32   : > { %p1392_p13 = scmp.ne.s32.totalorder %s1629_s9, %s1391_s11  ;;  %p1393_p0 = pneg %p1631_p11 }
  0x33   : > { %s1396_s14 = scalar_lea.hbm %s2026_s0, 6144  ;;  %p1397_p7 = scmp.lt.u32.totalorder %s1629_s9, %s2026_s0 }
  0x34   : > { %p1394_p3 = pnand %p1393_p0, %p1392_p13  ;;  %p1398_p9 = scmp.lt.u32.totalorder %s1396_s14, %s1391_s11 }
  0x35   : > { %p1400_p1 = scmp.lt.u32.totalorder %s1391_s11, %s1629_s9 }
  0x36   : > { %p1395_p5 = pneg %p1394_p3  ;;  %p1399_p2 = por %p1398_p9, %p1397_p7 }
  0x38   : > { %p1401_p4 = por %p1400_p1, %p1399_p2 }
  0x3a   : > { %p1402_p6 = pnand %p1401_p4, %p1395_p5 }
  0x3c   : > { %1405 = shalt.err (!%p1402_p6)
}
  0x3d   : > { %s1406_s5 = scalar_lea.vmem %s1635_s29, 3072  ;;  %s1496_s7 = smov [#allocation2]  }
  0x3e   : > { %p1407_p8 = scmp.ne.s32.totalorder %s1635_s29, %s1406_s5  ;;  %s1411_s26 = sshll.u32 %s1496_s7, 4  ;;  %s1412_s26 = int_to_ptr.vmem [resolvable:$false] %s1411_s26 }
  0x3f   : > { %s1413_s8 = scalar_lea.vmem %s1412_s26, 6144  ;;  %p1414_p3 = scmp.lt.s32.totalorder %s1635_s29, %s1412_s26 }
  0x40   : > { %p1409_p10 = pnand %p1407_p8, %p1393_p0  ;;  %p1415_p7 = scmp.lt.s32.totalorder %s1413_s8, %s1406_s5 }
  0x42   : > { %p1410_p13 = pneg %p1409_p10  ;;  %p1416_p9 = por %p1415_p7, %p1414_p3 }
  0x44   : > { %p1417_p2 = pnand %p1416_p9, %p1410_p13 }
  0x46   : > { %1420 = shalt.err (!%p1417_p2)
}
  0x47   : > { %s1497_s28 = smov 128   ;;  %s1498_s11 = smov 8  }
  0x48   : > { %1251 = dma.hbm_to_vmem [thread:$0]  (!%p1631_p11), %s1629_s9, 3072, %s1635_s29, %s1637_s10, %s1497_s28, %s1497_s28, %s1498_s11  }
  0x49   : > { %p2041_p0 = scmp.ne.s32.totalorder %s2036_s23, 0 }
  0x4a   : > { %s1668_s12 = sand.u32 (!%p2041_p0), 1, %s1483_s16   ;;  %p2042_p5 = scmp.ne.s32.totalorder (!%p2041_p0), %s2034_s21, 0 }
  0x4b   : > { %197 = sbr.rel (%p2041_p0) target bundleno = 1162 (0x48a), region = 36  ;;  %s200_s14 = scalar_lea.sflag (!%p2041_p0), [#allocation3], %s1668_s12 }
  0x4c   : > { %s1235_s13 = smul.u32 (!%p2041_p0), 192, %s1668_s12 }
  0x4e   : > { %s1672_s20 = scalar_lea.vmem (!%p2041_p0), [#allocation2], %s1235_s13 }
  0x52   : > { %1466 = dma.done.wait (%p2042_p5), %s200_s14, 3072  }
  0x53   : > { %1468 = vsyncadd (%p2042_p5), %s200_s14, 4294964224  ;;  %p2043_p11 = scmp.eq.s32.totalorder %s1550_s19, 0 }
  0x55   : > { %1470 = dma.done.wait (%p2043_p11), [#allocation6], 256   ;;  %p2044_p1 = pmov %p2043_p11 }
  0x56   : > { %v1303_v0 = vld [vmem:[#allocation5] sm:$0xff]   ;;  %v1304_v1 = vld [vmem:[#allocation5 + $0x8] sm:$0xff]   ;;  %vm295_vm0 = vcmask 261120   ;;  %v1697_v7 = vld [vmem:[%s1672_s20 + $0x10] sm:$0xff]  ;;  %vm624_vm1 = vcmask 1041409   ;;  %vm627_vm2 = vcmask 1042434  }
  0x57   : > { %1472 = vsyncadd (%p2044_p1), [#allocation6], 4294967040  ;;  %1201 = vmatprep.subr.bf16.mxu0 %v1303_v0  ;;  %1229 = vmatprep.subr.bf16.mxu1 %v1303_v0  ;;  %v1683_v2 = vld [vmem:[%s1672_s20] sm:$0xff]  ;;  %v1686_v3 = vld [vmem:[%s1672_s20 + $0x8] sm:$0xff]  ;;  %vm645_vm3 = vcmask 256000   ;;  %vm686_vm4 = vcmask 1043459  }
  0x58   : > { %v1689_v4 = vld [vmem:[%s1672_s20 + $0x60] sm:$0xff]  ;;  %1202 = vmatpush3.bf16.msra.mxu0 %v1303_v0  ;;  %1231 = vmatpush3.bf16.msra.mxu1 %v1303_v0  ;;  %v265_v5 = vpack.c.bf16 %v1686_v3, %v1683_v2  ;;  %v1694_v6 = vld [vmem:[%s1672_s20 + $0x68] sm:$0xff]  ;;  %v1700_v8 = vld [vmem:[%s1672_s20 + $0x18] sm:$0xff]  ;;  %vm689_vm5 = vcmask 19456   ;;  %s1162_s29 = sshll.u32 %s1668_s12, 6  ;;  %s1186_s6 = sshll.u32 %s1550_s19, 10 }
  0x59   : > { %1203 = vmatprep.subr.bf16.mxu0 %v1304_v1  ;;  %1230 = vmatprep.subr.bf16.mxu1 %v1304_v1  ;;  %v271_v9 = vpack.c.bf16 %v1694_v6, %v1689_v4  ;;  %v1705_v10 = vld [vmem:[%s1672_s20 + $0x70] sm:$0xff]  ;;  %v1708_v11 = vld [vmem:[%s1672_s20 + $0x78] sm:$0xff]  ;;  %v1711_v12 = vld [vmem:[%s1672_s20 + $0x20] sm:$0xff]  ;;  %v266_v16 = vpack.c.bf16 %v1700_v8, %v1697_v7  ;;  %s1929_s10 = scalar_lea.vmem [#allocation7], %s1162_s29  ;;  %s1976_s26 = scalar_lea.hbm %s2030_s4, %s1186_s6 }
  0x5a   : > { %1205 = vmatprep.mubr.msk.bf16.mxu0 %vm295_vm0, %v265_v5  ;;  %v1715_v13 = vld [vmem:[%s1672_s20 + $0x28] sm:$0xff]  ;;  %v1718_v14 = vld [vmem:[%s1672_s20 + $0x80] sm:$0xff]  ;;  %v272_v17 = vpack.c.bf16 %v1708_v11, %v1705_v10  ;;  %v1735_v20 = vld [vmem:[%s1672_s20 + $0x30] sm:$0xff]  ;;  %s1070_s5 = sshll.u32 %s1929_s10, 4  ;;  %s1056_s8 = scalar_lea.sflag [#allocation4], %s1668_s12  ;;  %s1978_s5 = int_to_ptr.vmem [resolvable:$true] %s1070_s5 }
  0x5b   : > { %v1721_v15 = vld [vmem:[%s1672_s20 + $0x88] sm:$0xff]  ;;  %1217 = vmatprep.mubr.msk.bf16.mxu1 %vm295_vm0, %v271_v9  ;;  %v267_v18 = vpack.c.bf16 %v1715_v13, %v1711_v12  ;;  %v1738_v21 = vld [vmem:[%s1672_s20 + $0x38] sm:$0xff]  ;;  %v1743_v22 = vld [vmem:[%s1672_s20 + $0x90] sm:$0xff]  ;;  %s1421_s28 = scalar_lea.vmem %s1978_s5, 1024  ;;  %s1501_s11 = smov [#allocation7]  }
  0x5c   : > { %1204 = vmatpush3.bf16.msra.mxu0 %v1304_v1  ;;  %1232 = vmatpush3.bf16.msra.mxu1 %v1304_v1  ;;  %v273_v19 = vpack.c.bf16 %v1721_v15, %v1718_v14  ;;  %v1746_v23 = vld [vmem:[%s1672_s20 + $0x98] sm:$0xff]  ;;  %v1749_v24 = vld [vmem:[%s1672_s20 + $0x40] sm:$0xff]  ;;  %v1752_v25 = vld [vmem:[%s1672_s20 + $0x48] sm:$0xff]  ;;  %v268_v28 = vpack.c.bf16 %v1738_v21, %v1735_v20  ;;  %p1422_p4 = scmp.ne.s32.totalorder %s1978_s5, %s1421_s28  ;;  %s1425_s13 = sshll.u32 %s1501_s11, 4  ;;  %s1426_s13 = int_to_ptr.vmem [resolvable:$false] %s1425_s13 }
  0x5d   : > { %v1755_v26 = vld [vmem:[%s1672_s20 + $0xa0] sm:$0xff]  ;;  %v1758_v27 = vld [vmem:[%s1672_s20 + $0xa8] sm:$0xff]  ;;  %v274_v29 = vpack.c.bf16 %v1746_v23, %v1743_v22  ;;  %v269_v30 = vpack.c.bf16 %v1752_v25, %v1749_v24  ;;  %v1771_v32 = vld [vmem:[%s1672_s20 + $0x50] sm:$0xff]  ;;  %s1427_s14 = scalar_lea.vmem %s1426_s13, 2048  ;;  %p1428_p10 = scmp.lt.s32.totalorder %s1978_s5, %s1426_s13 }
  0x5e   : > { %v275_v31 = vpack.c.bf16 %v1758_v27, %v1755_v26  ;;  %v1776_v33 = vld [vmem:[%s1672_s20 + $0x58] sm:$0xff]  ;;  %v1779_v34 = vld [vmem:[%s1672_s20 + $0xb0] sm:$0xff]  ;;  %v1793_v38 = vld [vmem:[%s2028_s2] ss:$0 sm:$0xff]  ;;  %p1423_p6 = pnand %p1422_p4, %p1620_p12  ;;  %p1429_p13 = scmp.lt.s32.totalorder %s1427_s14, %s1421_s28 }
  0x5f   : > { %1206 = vmatmul.mubr.msk.bf16.vlgmr.msra.gmra.mrb[0].mxu0 %vm295_vm0, %v266_v16  ;;  %1218 = vmatmul.mubr.msk.bf16.vlgmr.msra.gmra.mrb[0].mxu1 %vm295_vm0, %v272_v17  ;;  %v1782_v35 = vld [vmem:[%s1672_s20 + $0xb8] sm:$0xff]  ;;  %v270_v36 = vpack.c.bf16 %v1776_v33, %v1771_v32 }
  0x60   : > { %1209 = vmatprep.mubr.msk.bf16.mxu0 %vm295_vm0, %v267_v18  ;;  %1221 = vmatprep.mubr.msk.bf16.mxu1 %vm295_vm0, %v273_v19  ;;  %v276_v37 = vpack.c.bf16 %v1782_v35, %v1779_v34  ;;  %p1424_p8 = pneg %p1423_p6  ;;  %p1430_p3 = por %p1429_p13, %p1428_p10 }
  0x62   : > { %p1431_p7 = pnand %p1430_p3, %p1424_p8 }
  0x67   : > { %1210 = vmatmul.mubr.msk.bf16.gmra.mrb[4].mxu0 %vm295_vm0, %v268_v28  ;;  %1222 = vmatmul.mubr.msk.bf16.gmra.mrb[4].mxu1 %vm295_vm0, %v274_v29 }
  0x68   : > { %1213 = vmatprep.mubr.msk.bf16.mxu0 %vm295_vm0, %v269_v30  ;;  %1225 = vmatprep.mubr.msk.bf16.mxu1 %vm295_vm0, %v275_v31 }
  0x6f   : > { %1214 = vmatmul.mubr.msk.bf16.gmra.mrb[8].mxu0 %vm295_vm0, %v270_v36  ;;  %1226 = vmatmul.mubr.msk.bf16.gmra.mrb[8].mxu1 %vm295_vm0, %v276_v37 }
 0x132   : > { %v1207_v39 = vpop.f32.mrb[0].mxu0  ;;  %v1219_v40 = vpop.f32.mrb[0].mxu1 }
 0x133   : > { %v375_v41 = vadd.f32 %v1207_v39, %v1793_v38  ;;  %v423_v42 = vadd.f32 %v1219_v40, %v1793_v38  ;;  %v366_v43 = vpop.f32.mrb[1].mxu0  ;;  %v414_v44 = vpop.f32.mrb[1].mxu1 }
 0x134   : > { %v367_v45 = vadd.f32 %v1793_v38, %v366_v43  ;;  %v415_v46 = vadd.f32 %v1793_v38, %v414_v44  ;;  %v1208_v47 = vpop.f32.mrb[2].mxu0  ;;  %v1220_v48 = vpop.f32.mrb[2].mxu1 }
 0x135   : > { %1305 = vtanh.f32 %v375_v41  ;;  %v378_v49 = vadd.f32 %v1208_v47, %v1793_v38  ;;  %v369_v50 = vpop.f32.mrb[3].mxu0  ;;  %v417_v51 = vpop.f32.mrb[3].mxu1  ;;  %v426_v52 = vadd.f32 %v1220_v48, %v1793_v38 }
 0x136   : > { %1307 = vtanh.f32 %v423_v42  ;;  %v370_v53 = vadd.f32 %v1793_v38, %v369_v50  ;;  %v418_v54 = vadd.f32 %v1793_v38, %v417_v51 }
 0x137   : > { %1309 = vtanh.f32 %v367_v45 }
 0x138   : > { %1311 = vtanh.f32 %v415_v46 }
 0x139   : > { %1313 = vtanh.f32 %v378_v49 }
 0x13a   : > { %1315 = vtanh.f32 %v426_v52  ;;  %v1211_v55 = vpop.f32.mrb[4].mxu0  ;;  %v1223_v56 = vpop.f32.mrb[4].mxu1 }
 0x13b   : > { %1317 = vtanh.f32 %v370_v53  ;;  %v391_v57 = vadd.f32 %v1211_v55, %v1793_v38  ;;  %v439_v58 = vadd.f32 %v1223_v56, %v1793_v38  ;;  %v382_v59 = vpop.f32.mrb[5].mxu0  ;;  %v430_v60 = vpop.f32.mrb[5].mxu1 }
 0x13c   : > { %1319 = vtanh.f32 %v418_v54  ;;  %v383_v61 = vadd.f32 %v1793_v38, %v382_v59  ;;  %v431_v62 = vadd.f32 %v1793_v38, %v430_v60  ;;  %v1212_v63 = vpop.f32.mrb[6].mxu0  ;;  %v1224_v0 = vpop.f32.mrb[6].mxu1 }
 0x13d   : > { %1321 = vtanh.f32 %v391_v57  ;;  %v394_v1 = vadd.f32 %v1212_v63, %v1793_v38  ;;  %v385_v5 = vpop.f32.mrb[7].mxu0  ;;  %v433_v9 = vpop.f32.mrb[7].mxu1  ;;  %v442_v16 = vadd.f32 %v1224_v0, %v1793_v38 }
 0x13e   : > { %1323 = vtanh.f32 %v439_v58  ;;  %v386_v18 = vadd.f32 %v1793_v38, %v385_v5  ;;  %v434_v28 = vadd.f32 %v1793_v38, %v433_v9 }
 0x13f   : > { %v1306_v17 = vpop.eup %1305  ;;  %1325 = vtanh.f32 %v383_v61 }
 0x140   : > { %v1308_v19 = vpop.eup %1307  ;;  %1327 = vtanh.f32 %v431_v62  ;;  %v494_v31 = vsel %vm295_vm0, %v1306_v17, 0.0 }
 0x141   : > { %v1310_v29 = vpop.eup %1309  ;;  %1329 = vtanh.f32 %v394_v1  ;;  %v548_v36 = vsel %vm295_vm0, %v1308_v19, 0.0 }
 0x142   : > { %v1312_v30 = vpop.eup %1311  ;;  %v485_v37 = vsel %vm295_vm0, %v1310_v29, 0.0  ;;  %1331 = vtanh.f32 %v442_v16  ;;  %v1215_v39 = vpop.f32.mrb[8].mxu0 }
 0x143   : > { %v1227_v40 = vpop.f32.mrb[8].mxu1  ;;  %v1314_v41 = vpop.eup %1313  ;;  %v539_v42 = vsel %vm295_vm0, %v1312_v30, 0.0  ;;  %1333 = vtanh.f32 %v386_v18  ;;  %v407_v43 = vadd.f32 %v1215_v39, %v1793_v38 }
 0x144   : > { %v455_v44 = vadd.f32 %v1227_v40, %v1793_v38  ;;  %v398_v45 = vpop.f32.mrb[9].mxu0  ;;  %v446_v46 = vpop.f32.mrb[9].mxu1  ;;  %v495_v48 = vsel %vm295_vm0, %v1314_v41, 0.0  ;;  %1335 = vtanh.f32 %v434_v28 }
 0x145   : > { %v1316_v47 = vpop.eup %1315  ;;  %v399_v49 = vadd.f32 %v1793_v38, %v398_v45  ;;  %v447_v50 = vadd.f32 %v1793_v38, %v446_v46  ;;  %v1216_v51 = vpop.f32.mrb[10].mxu0  ;;  %v496_v54 = vadd.f32 %v495_v48, %v494_v31  ;;  %1337 = vtanh.f32 %v407_v43 }
 0x146   : > { %v1228_v52 = vpop.f32.mrb[10].mxu1  ;;  %v1318_v53 = vpop.eup %1317  ;;  %v549_v55 = vsel %vm295_vm0, %v1316_v47, 0.0  ;;  %v410_v56 = vadd.f32 %v1216_v51, %v1793_v38  ;;  %1339 = vtanh.f32 %v455_v44 }
 0x147   : > { %v401_v57 = vpop.f32.mrb[11].mxu0  ;;  %v449_v58 = vpop.f32.mrb[11].mxu1  ;;  %v550_v60 = vadd.f32 %v549_v55, %v548_v36  ;;  %v486_v61 = vsel %vm295_vm0, %v1318_v53, 0.0  ;;  %v458_v62 = vadd.f32 %v1228_v52, %v1793_v38  ;;  %v497_v0 = vrot.slane %v496_v54, 4 }
 0x148   : > { %v1320_v59 = vpop.eup %1319  ;;  %v487_v1 = vadd.f32 %v486_v61, %v485_v37  ;;  %1341 = vtanh.f32 %v399_v49  ;;  %v402_v30 = vadd.f32 %v1793_v38, %v401_v57  ;;  %v450_v39 = vadd.f32 %v1793_v38, %v449_v58 }
 0x149   : > { %v1322_v63 = vpop.eup %1321  ;;  %v540_v5 = vsel %vm295_vm0, %v1320_v59, 0.0  ;;  %v551_v16 = vrot.slane %v550_v60, 4  ;;  %1343 = vtanh.f32 %v447_v50  ;;  %v498_v47 = vadd.f32 %v497_v0, %v496_v54 }
 0x14a   : > { %v1324_v9 = vpop.eup %1323  ;;  %v541_v17 = vadd.f32 %v540_v5, %v539_v42  ;;  %v512_v18 = vsel %vm295_vm0, %v1322_v63, 0.0  ;;  %v488_v28 = vrot.slane %v487_v1, 4  ;;  %1345 = vtanh.f32 %v410_v56 }
 0x14b   : > { %v1326_v19 = vpop.eup %1325  ;;  %v566_v29 = vsel %vm295_vm0, %v1324_v9, 0.0  ;;  %1347 = vtanh.f32 %v458_v62  ;;  %v552_v42 = vadd.f32 %v551_v16, %v550_v60  ;;  %v499_v57 = vrot.slane %v498_v47, 2 }
 0x14c   : > { %v1328_v31 = vpop.eup %1327  ;;  %v542_v36 = vrot.slane %v541_v17, 4  ;;  %v503_v37 = vsel %vm295_vm0, %v1326_v19, 0.0  ;;  %1349 = vtanh.f32 %v402_v30  ;;  %v489_v43 = vadd.f32 %v488_v28, %v487_v1  ;;  %v1844_v30 = vld [vmem:[%s2029_s3] ss:$0 sm:$0xff] }
 0x14d   : > { %v1330_v40 = vpop.eup %1329  ;;  %v557_v41 = vsel %vm295_vm0, %v1328_v31, 0.0  ;;  %1351 = vtanh.f32 %v450_v39  ;;  %v553_v51 = vrot.slane %v552_v42, 2  ;;  %v500_v19 = vadd.f32 %v499_v57, %v498_v47 }
 0x14e   : > { %v1332_v44 = vpop.eup %1331  ;;  %v513_v45 = vsel %vm295_vm0, %v1330_v40, 0.0  ;;  %v543_v46 = vadd.f32 %v542_v36, %v541_v17  ;;  %v490_v52 = vrot.slane %v489_v43, 2 }
 0x14f   : > { %v1334_v48 = vpop.eup %1333  ;;  %v1832_v49 = vadd.f32 %v513_v45, %v512_v18  ;;  %v567_v50 = vsel %vm295_vm0, %v1332_v44, 0.0  ;;  %v554_v61 = vadd.f32 %v553_v51, %v552_v42  ;;  %v501_v44 = vrot.slane %v500_v19, 1 }
 0x150   : > { %v1336_v38 = vpop.eup %1335  ;;  %v568_v53 = vadd.f32 %v567_v50, %v566_v29  ;;  %v504_v55 = vsel %vm295_vm0, %v1334_v48, 0.0  ;;  %v544_v56 = vrot.slane %v543_v46, 2  ;;  %v491_v18 = vadd.f32 %v490_v52, %v489_v43 }
 0x151   : > { %v1338_v58 = vpop.eup %1337  ;;  %v515_v59 = vrot.slane %v1832_v49, 4  ;;  %v505_v60 = vadd.f32 %v504_v55, %v503_v37  ;;  %v558_v54 = vsel %vm295_vm0, %v1336_v38, 0.0  ;;  %v555_v17 = vrot.slane %v554_v61, 1 }
 0x152   : > { %v1340_v62 = vpop.eup %1339  ;;  %v569_v63 = vrot.slane %v568_v53, 4  ;;  %v559_v0 = vadd.f32 %v558_v54, %v557_v41  ;;  %v530_v1 = vsel %vm295_vm0, %v1338_v58, 0.0  ;;  %v545_v5 = vadd.f32 %v544_v56, %v543_v46 }
 0x153   : > { %v1342_v9 = vpop.eup %1341  ;;  %v584_v16 = vsel %vm295_vm0, %v1340_v62, 0.0  ;;  %v506_v37 = vrot.slane %v505_v60, 4  ;;  %v556_v41 = vadd.f32 %v555_v17, %v554_v61  ;;  %v492_v42 = vrot.slane %v491_v18, 1 }
 0x154   : > { %v1344_v28 = vpop.eup %1343  ;;  %v521_v29 = vsel %vm295_vm0, %v1342_v9, 0.0  ;;  %v546_v31 = vrot.slane %v545_v5, 1  ;;  %v560_v36 = vrot.slane %v559_v0, 4 }
 0x155   : > { %v1346_v39 = vpop.eup %1345  ;;  %v575_v40 = vsel %vm295_vm0, %v1344_v28, 0.0  ;;  %v507_v48 = vadd.f32 %v506_v37, %v505_v60  ;;  %v606_v38 = vmul.f32 %v1844_v30, %v556_v41  ;;  %v493_v55 = vadd.f32 %v492_v42, %v491_v18 }
 0x156   : > { %v1348_v45 = vpop.eup %1347  ;;  %v531_v43 = vsel %vm295_vm0, %v1346_v39, 0.0  ;;  %v547_v46 = vadd.f32 %v546_v31, %v545_v5  ;;  %v561_v47 = vadd.f32 %v560_v36, %v559_v0  ;;  %v502_v60 = vadd.f32 %v501_v44, %v500_v19 }
 0x157   : > { %v1350_v50 = vpop.eup %1349  ;;  %v532_v51 = vadd.f32 %v531_v43, %v530_v1  ;;  %v585_v52 = vsel %vm295_vm0, %v1348_v45, 0.0  ;;  %v633_v0 = vrot.slane %v606_v38, 7  ;;  %v508_v17 = vrot.slane %v507_v48, 2 }
 0x158   : > { %v1352_v56 = vpop.eup %1351  ;;  %v586_v57 = vadd.f32 %v585_v52, %v584_v16  ;;  %v522_v58 = vsel %vm295_vm0, %v1350_v50, 0.0  ;;  %v562_v54 = vrot.slane %v561_v47, 2  ;;  %v605_v61 = vmul.f32 %v1844_v30, %v547_v46 }
 0x159   : > { %v523_v62 = vadd.f32 %v522_v58, %v521_v29  ;;  %v576_v9 = vsel %vm295_vm0, %v1352_v56, 0.0  ;;  %v599_v28 = vmul.f32 %v1844_v30, %v493_v55  ;;  %v600_v31 = vmul.f32 %v1844_v30, %v502_v60 }
 0x15a   : > { %v577_v5 = vadd.f32 %v576_v9, %v575_v40  ;;  %v563_v1 = vadd.f32 %v562_v54, %v561_v47  ;;  %v634_v16 = vsel %vm624_vm1, %v633_v0, %v605_v61  ;;  %v570_v36 = vadd.f32 %v569_v63, %v568_v53 }
 0x15b   : > { %v524_v18 = vrot.slane %v523_v62, 4  ;;  %v509_v29 = vadd.f32 %v508_v17, %v507_v48  ;;  %v587_v41 = vrot.slane %v586_v57, 4  ;;  %v623_v42 = vrot.slane %v600_v31, 7 }
 0x15c   : > { %v578_v37 = vrot.slane %v577_v5, 4  ;;  %v564_v39 = vrot.slane %v563_v1, 1  ;;  %v571_v45 = vrot.slane %v570_v36, 2  ;;  %v516_v19 = vadd.f32 %v515_v59, %v1832_v49 }
 0x15d   : > { %v525_v40 = vadd.f32 %v524_v18, %v523_v62  ;;  %v510_v43 = vrot.slane %v509_v29, 1  ;;  %v588_v47 = vadd.f32 %v587_v41, %v586_v57  ;;  %v625_v50 = vsel %vm624_vm1, %v623_v42, %v599_v28 }
 0x15e   : > { %v565_v44 = vadd.f32 %v564_v39, %v563_v1  ;;  %v579_v46 = vadd.f32 %v578_v37, %v577_v5  ;;  %v572_v52 = vadd.f32 %v571_v45, %v570_v36  ;;  %v517_v38 = vrot.slane %v516_v19, 2 }
 0x15f   : > { %v526_v55 = vrot.slane %v525_v40, 2  ;;  %v511_v63 = vadd.f32 %v510_v43, %v509_v29  ;;  %v589_v48 = vrot.slane %v588_v47, 2  ;;  %v533_v9 = vrot.slane %v532_v51, 4 }
 0x160   : > { %v607_v53 = vmul.f32 %v1844_v30, %v565_v44  ;;  %v580_v56 = vrot.slane %v579_v46, 2  ;;  %v573_v58 = vrot.slane %v572_v52, 1  ;;  %v518_v54 = vadd.f32 %v517_v38, %v516_v19 }
 0x161   : > { %v527_v61 = vadd.f32 %v526_v55, %v525_v40  ;;  %v601_v59 = vmul.f32 %v1844_v30, %v511_v63  ;;  %v590_v0 = vadd.f32 %v589_v48, %v588_v47  ;;  %v534_v5 = vadd.f32 %v533_v9, %v532_v51 }
 0x162   : > { %v635_v49 = vrot.slane %v607_v53, 6  ;;  %v581_v62 = vadd.f32 %v580_v56, %v579_v46  ;;  %v519_v57 = vrot.slane %v518_v54, 1  ;;  %v574_v36 = vadd.f32 %v573_v58, %v572_v52 }
 0x163   : > { %v528_v60 = vrot.slane %v527_v61, 1  ;;  %v626_v17 = vrot.slane %v601_v59, 6  ;;  %v591_v18 = vrot.slane %v590_v0, 1  ;;  %v535_v45 = vrot.slane %v534_v5, 2 }
 0x164   : > { %v636_v1 = vsel %vm627_vm2, %v635_v49, %v634_v16  ;;  %v582_v28 = vrot.slane %v581_v62, 1  ;;  %v520_v37 = vadd.f32 %v519_v57, %v518_v54  ;;  %v608_v47 = vmul.f32 %v1844_v30, %v574_v36 }
 0x165   : > { %v652_v31 = vsel %vm645_vm3, %v636_v1, 0.0  ;;  %v529_v39 = vadd.f32 %v528_v60, %v527_v61  ;;  %v628_v29 = vsel %vm627_vm2, %v626_v17, %v625_v50  ;;  %v592_v42 = vadd.f32 %v591_v18, %v590_v0 }
 0x166   : > { %653 = vadd.xlane.f32.xlu1 %v652_v31  ;;  %v583_v41 = vadd.f32 %v582_v28, %v581_v62  ;;  %v646_v19 = vsel %vm645_vm3, %v628_v29, 0.0  ;;  %v536_v44 = vadd.f32 %v535_v45, %v534_v5  ;;  %v602_v43 = vmul.f32 %v1844_v30, %v520_v37 }
 0x167   : > { %v603_v51 = vmul.f32 %v1844_v30, %v529_v39  ;;  %647 = vadd.xlane.f32.xlu0 %v646_v19  ;;  %v610_v40 = vmul.f32 %v1844_v30, %v592_v42  ;;  %v666_v49 = vlaneseq  ;;  %v1499_v19 = vmov 0  }
 0x168   : > { %v609_v16 = vmul.f32 %v1844_v30, %v583_v41  ;;  %v537_v50 = vrot.slane %v536_v44, 1  ;;  %1302 = vset.pattern.permute.xlu0 %v1499_v19  ;;  %1301 = vset.pattern.permute.xlu1 %v1499_v19 }
 0x169   : > { %v629_v46 = vrot.slane %v603_v51, 7  ;;  %v639_v38 = vrot.slane %v610_v40, 6  ;;  %v667_v62 = vand.u32 127, %v666_v49  ;;  %v1876_v0 = vshrl.u32 %v666_v49, 7 }
 0x16a   : > { %v637_v52 = vrot.slane %v609_v16, 7  ;;  %v538_v63 = vadd.f32 %v537_v50, %v536_v44 }
 0x16b   : > { %v630_v55 = vsel %vm624_vm1, %v629_v46, %v602_v43  ;;  %v670_v5 = vsub.s32 %v667_v62, %v1876_v0  ;;  %v1884_v51 = vsub.s32 0, %v1876_v0  ;;  %v700_v16 = vsub.s32 1, %v1876_v0 }
 0x16c   : > { %v638_v53 = vsel %vm624_vm1, %v637_v52, %v608_v47  ;;  %v604_v58 = vmul.f32 %v1844_v30, %v538_v63  ;;  %v704_v40 = vsub.s32 2, %v1876_v0  ;;  %v708_v44 = vsub.s32 3, %v1876_v0 }
 0x16d   : > { %v640_v56 = vsel %vm627_vm2, %v639_v38, %v638_v53 }
 0x16e   : > { %v655_v48 = vsel %vm645_vm3, %v640_v56, 0.0  ;;  %v631_v54 = vrot.slane %v604_v58, 6 }
 0x16f   : > { %656 = vadd.xlane.f32.xlu1 %v655_v48 }
 0x170   : > { %v632_v61 = vsel %vm627_vm2, %v631_v54, %v630_v55 }
 0x171   : > { %v649_v9 = vsel %vm645_vm3, %v632_v61, 0.0 }
 0x172   : > { %650 = vadd.xlane.f32.xlu0 %v649_v9 }
 0x1f3   : > { %v654_v59 = vpop.xlane.xlu1 %653 }
 0x1f4   : > { %v648_v57 = vpop.xlane.xlu0 %647  ;;  %v660_v17 = vmul.f32 0.0625, %v654_v59 }
 0x1f5   : > { %v658_v1 = vmul.f32 0.0625, %v648_v57 }
 0x1f6   : > { %v679_v37 = vrot.slane %v660_v17, %v670_v5 }
 0x1f7   : > { %v671_v31 = vrot.slane %v658_v1, %v670_v5 }
 0x1fc   : > { %v657_v60 = vpop.xlane.xlu1 %656 }
 0x1fd   : > { %v661_v30 = vmul.f32 0.0625, %v657_v60 }
 0x1ff   : > { %v651_v28 = vpop.xlane.xlu0 %650  ;;  %v683_v39 = vrot.slane %v661_v30, %v670_v5 }
 0x200   : > { %v659_v18 = vmul.f32 0.0625, %v651_v28 }
 0x202   : > { %v675_v36 = vrot.slane %v659_v18, %v670_v5 }
 0x204   : > { %v684_v29 = vsel %vm624_vm1, %v675_v36, %v671_v31 }
 0x205   : > { %v685_v41 = vsel %vm627_vm2, %v679_v37, %v684_v29 }
 0x206   : > { %v687_v42 = vsel %vm686_vm4, %v683_v39, %v685_v41  ;;  %v1500_v41 = vmov 1966171168  }
 0x207   : > { %v690_v45 = vsel %vm689_vm5, %v687_v42, -inf  ;;  %v796_v42 = vunpack.c.l.s4 %v1500_v41 }
 0x208   : > { %691 = vmax.xlane.f32.xlu0 %v690_v45 }
 0x209   : > { %v797_v45 = vunpack.c.0.s8 %v796_v42 }
 0x295   : > { %v692_v43 = vpop.xlane.xlu0 %691 }
 0x296   : > { %v697_v46 = vrot.slane %v692_v43, %v1884_v51  ;;  %v701_v47 = vrot.slane %v692_v43, %v700_v16  ;;  %v705_v52 = vrot.slane %v692_v43, %v704_v40  ;;  %v709_v50 = vrot.slane %v692_v43, %v708_v44 }
 0x297   : > { %v800_v43 = vsub.s32 %v797_v45, %v1876_v0 }
 0x298   : > { %v714_v38 = vsub.f32 %v658_v1, %v697_v46  ;;  %v715_v55 = vsub.f32 %v659_v18, %v701_v47  ;;  %v716_v53 = vsub.f32 %v660_v17, %v705_v52  ;;  %v717_v48 = vsub.f32 %v661_v30, %v709_v50 }
 0x29a   : > { %v718_v63 = vmul.f32 1.442695, %v714_v38  ;;  %v720_v56 = vmul.f32 1.442695, %v715_v55  ;;  %v722_v58 = vmul.f32 1.442695, %v716_v53 }
 0x29b   : > { %v724_v54 = vmul.f32 1.442695, %v717_v48 }
 0x29c   : > { %1353 = vpow2.f32 %v718_v63 }
 0x29d   : > { %1355 = vpow2.f32 %v720_v56 }
 0x29e   : > { %1357 = vpow2.f32 %v722_v58 }
 0x29f   : > { %1359 = vpow2.f32 %v724_v54 }
 0x2a6   : > { %v1354_v61 = vpop.eup %1353 }
 0x2a7   : > { %v1356_v9 = vpop.eup %1355  ;;  %731 = vperm.xlu1 %1301, %v1354_v61  }
 0x2a8   : > { %734 = vperm.xlu0 %1302, %v1356_v9   ;;  %v1358_v49 = vpop.eup %1357 }
 0x2a9   : > { %v1360_v59 = vpop.eup %1359 }
 0x2ab   : > { %737 = vperm.xlu1 %1301, %v1358_v49  }
 0x2af   : > { %740 = vperm.xlu1 %1301, %v1360_v59  }
 0x326   : > { %v732_v62 = vpop.permute.xlu1 %731 }
 0x327   : > { %v735_v57 = vpop.permute.xlu0 %734  ;;  %v745_v17 = vrot.slane %v732_v62, %v670_v5 }
 0x328   : > { %v749_v1 = vrot.slane %v735_v57, %v670_v5 }
 0x32a   : > { %v738_v60 = vpop.permute.xlu1 %737  ;;  %v758_v18 = vsel %vm624_vm1, %v749_v1, %v745_v17 }
 0x32b   : > { %v753_v28 = vrot.slane %v738_v60, %v670_v5 }
 0x32d   : > { %v759_v36 = vsel %vm627_vm2, %v753_v28, %v758_v18 }
 0x32e   : > { %v741_v30 = vpop.permute.xlu1 %740 }
 0x32f   : > { %v757_v31 = vrot.slane %v741_v30, %v670_v5 }
 0x331   : > { %v760_v37 = vsel %vm686_vm4, %v757_v31, %v759_v36 }
 0x332   : > { %v762_v39 = vsel %vm689_vm5, %v760_v37, 0.0 }
 0x333   : > { %763 = vadd.xlane.f32.xlu1 %v762_v39 }
 0x3c0   : > { %v764_v29 = vpop.xlane.xlu1 %763 }
 0x3c1   : > { %1361 = vrcp.f32 %v764_v29 }
 0x3cb   : > { %v1362_v19 = vpop.eup %1361 }
 0x3cc   : > { %v778_v46 = vrot.slane %v1362_v19, %v704_v40  ;;  %v770_v47 = vrot.slane %v1362_v19, %v1884_v51  ;;  %v774_v52 = vrot.slane %v1362_v19, %v700_v16  ;;  %v782_v5 = vrot.slane %v1362_v19, %v708_v44 }
 0x3ce   : > { %v789_v50 = vmul.f32 %v1358_v49, %v778_v46  ;;  %v787_v38 = vmul.f32 %v1354_v61, %v770_v47  ;;  %v788_v55 = vmul.f32 %v1356_v9, %v774_v52  ;;  %v790_v53 = vmul.f32 %v1360_v59, %v782_v5 }
 0x3d0   : > { %v847_v63 = vrot.slane %v789_v50, %v800_v43  ;;  %v801_v56 = vrot.slane %v787_v38, %v800_v43  ;;  %v824_v48 = vrot.slane %v788_v55, %v800_v43  ;;  %v870_v58 = vrot.slane %v790_v53, %v800_v43 }
 0x3d2   : > { %v855_v54 = vrot.slane %v847_v63, %v800_v43  ;;  %v809_v62 = vrot.slane %v801_v56, %v800_v43  ;;  %v832_v57 = vrot.slane %v824_v48, %v800_v43  ;;  %v878_v1 = vrot.slane %v870_v58, %v800_v43 }
 0x3d3   : > { %v802_v9 = vcombine.high %v801_v56, %v801_v56  ;;  %v825_v28 = vcombine.high %v824_v48, %v824_v48  ;;  %v848_v31 = vcombine.high %v847_v63, %v847_v63  ;;  %v871_v39 = vcombine.high %v870_v58, %v870_v58 }
 0x3d4   : > { %v914_v60 = vrot.slane %v855_v54, %v1884_v51  ;;  %v890_v0 = vrot.slane %v809_v62, %v1884_v51  ;;  %v840_v40 = vcombine.high %v832_v57, %v832_v57  ;;  %v902_v44 = vrot.slane %v832_v57, %v1884_v51 }
 0x3d5   : > { %v886_v61 = vcombine.high %v878_v1, %v878_v1  ;;  %v926_v59 = vrot.slane %v878_v1, %v1884_v51  ;;  %v816_v17 = vrot.slane %v802_v9, %v800_v43  ;;  %v839_v18 = vrot.slane %v825_v28, %v800_v43 }
 0x3d6   : > { %960 = vperm.xlu1 %1301, %v914_v60   ;;  %936 = vperm.xlu0 %1302, %v890_v0   ;;  %v910_v16 = vrot.slane %v840_v40, %v1884_v51  ;;  %v862_v37 = vrot.slane %v848_v31, %v800_v43  ;;  %v885_v41 = vrot.slane %v871_v39, %v800_v43 }
 0x3d7   : > { %v934_v49 = vrot.slane %v886_v61, %v1884_v51  ;;  %v894_v30 = vrot.slane %v816_v17, %v1884_v51  ;;  %v906_v36 = vrot.slane %v839_v18, %v1884_v51  ;;  %v817_v45 = vcombine.high %v809_v62, %v809_v62 }
 0x3d8   : > { %v918_v29 = vrot.slane %v862_v37, %v1884_v51  ;;  %v930_v42 = vrot.slane %v885_v41, %v1884_v51  ;;  %v863_v46 = vcombine.high %v855_v54, %v855_v54 }
 0x3d9   : > { %v898_v19 = vrot.slane %v817_v45, %v1884_v51 }
 0x3da   : > { %956 = vperm.xlu1 %1301, %v910_v16   ;;  %948 = vperm.xlu0 %1302, %v902_v44   ;;  %v922_v47 = vrot.slane %v863_v46, %v1884_v51 }
 0x3de   : > { %980 = vperm.xlu1 %1301, %v934_v49   ;;  %972 = vperm.xlu0 %1302, %v926_v59  }
 0x3e2   : > { %940 = vperm.xlu0 %1302, %v894_v30  }
 0x3e6   : > { %952 = vperm.xlu0 %1302, %v906_v36  }
 0x3ea   : > { %964 = vperm.xlu0 %1302, %v918_v29  }
 0x3ee   : > { %976 = vperm.xlu0 %1302, %v930_v42  }
 0x3f2   : > { %944 = vperm.xlu0 %1302, %v898_v19  }
 0x3f6   : > { %968 = vperm.xlu0 %1302, %v922_v47  }
 0x455   : > { %v937_v52 = vpop.permute.xlu0 %936  ;;  %v961_v50 = vpop.permute.xlu1 %960 }
 0x456   : > { %v995_v49 = vmul.f32 %v961_v50, %v1689_v4  ;;  %v996_v59 = vmul.f32 %v961_v50, %v1694_v6  ;;  %v983_v17 = vmul.f32 %v937_v52, %v1683_v2  ;;  %v984_v28 = vmul.f32 %v937_v52, %v1686_v3 }
 0x459   : > { %v949_v5 = vpop.permute.xlu0 %948  ;;  %v957_v53 = vpop.permute.xlu1 %956 }
 0x45a   : > { %v989_v43 = vmul.f32 %v949_v5, %v1735_v20  ;;  %v990_v63 = vmul.f32 %v949_v5, %v1738_v21  ;;  %v993_v48 = vmul.f32 %v957_v53, %v1771_v32  ;;  %v994_v58 = vmul.f32 %v957_v53, %v1776_v33 }
 0x45b   : > { %v1032_v53 = vsel %vm295_vm0, %v996_v59, 0.0 }
 0x45c   : > { %v1017_v62 = vsel %vm295_vm0, %v989_v43, 0.0  ;;  %v1022_v57 = vsel %vm295_vm0, %v990_v63, 0.0  ;;  %v1020_v32 = vsel %vm295_vm0, %v993_v48, 0.0  ;;  %v1025_v33 = vsel %vm295_vm0, %v994_v58, 0.0 }
 0x45d   : > { %v973_v38 = vpop.permute.xlu0 %972  ;;  %v981_v1 = vpop.permute.xlu1 %980 }
 0x461   : > { %v941_v55 = vpop.permute.xlu0 %940 }
 0x462   : > { %v985_v16 = vmul.f32 %v941_v55, %v1697_v7  ;;  %v986_v44 = vmul.f32 %v941_v55, %v1700_v8  ;;  %v1005_v8 = vmul.f32 %v981_v1, %v1779_v34  ;;  %v1027_v55 = vsel %vm295_vm0, %v995_v49, 0.0 }
 0x464   : > { %v1013_v30 = vsel %vm295_vm0, %v986_v44, 0.0  ;;  %v1040_v29 = vsel %vm295_vm0, %v1005_v8, 0.0 }
 0x465   : > { %v953_v56 = vpop.permute.xlu0 %952 }
 0x466   : > { %v991_v54 = vmul.f32 %v953_v56, %v1749_v24  ;;  %v992_v51 = vmul.f32 %v953_v56, %v1752_v25  ;;  %v1001_v24 = vmul.f32 %v973_v38, %v1743_v22  ;;  %v1002_v25 = vmul.f32 %v973_v38, %v1746_v23 }
 0x467   : > { %v1006_v22 = vmul.f32 %v981_v1, %v1782_v35  ;;  %v1008_v23 = vsel %vm295_vm0, %v985_v16, 0.0 }
 0x468   : > { %v1018_v60 = vsel %vm295_vm0, %v991_v54, 0.0  ;;  %v1023_v20 = vsel %vm295_vm0, %v992_v51, 0.0  ;;  %v1037_v2 = vsel %vm295_vm0, %v1001_v24, 0.0  ;;  %v1042_v3 = vsel %vm295_vm0, %v1002_v25, 0.0 }
 0x469   : > { %v1019_v0 = vadd.f32 %v1018_v60, %v1017_v62  ;;  %v1024_v21 = vadd.f32 %v1023_v20, %v1022_v57  ;;  %v965_v40 = vpop.permute.xlu0 %964  ;;  %v1045_v41 = vsel %vm295_vm0, %v1006_v22, 0.0 }
 0x46a   : > { %v997_v18 = vmul.f32 %v965_v40, %v1705_v10  ;;  %v998_v31 = vmul.f32 %v965_v40, %v1708_v11 }
 0x46b   : > { %v1021_v61 = vadd.f32 %v1020_v32, %v1019_v0  ;;  %v1026_v9 = vadd.f32 %v1025_v33, %v1024_v21 }
 0x46c   : > { %v1028_v47 = vsel %vm295_vm0, %v997_v18, 0.0  ;;  %v1033_v52 = vsel %vm295_vm0, %v998_v31, 0.0 }
 0x46d   : > { %1049 = vst.msk [vmem:[%s1929_s10 + $0x10] sm:$0xff] %vm295_vm0, %v1021_v61  ;;  %1050 = vst.msk [vmem:[%s1929_s10 + $0x18] sm:$0xff] %vm295_vm0, %v1026_v9  ;;  %v977_v7 = vpop.permute.xlu0 %976  ;;  %v1029_v56 = vadd.f32 %v1028_v47, %v1027_v55  ;;  %v1034_v48 = vadd.f32 %v1033_v52, %v1032_v53 }
 0x46e   : > { %v1003_v4 = vmul.f32 %v977_v7, %v1755_v26  ;;  %v1004_v6 = vmul.f32 %v977_v7, %v1758_v27  ;;  %v1007_v26 = vsel %vm295_vm0, %v983_v17, 0.0  ;;  %v1012_v27 = vsel %vm295_vm0, %v984_v28, 0.0 }
 0x46f   : > { %v1009_v42 = vadd.f32 %v1008_v23, %v1007_v26  ;;  %v1014_v45 = vadd.f32 %v1013_v30, %v1012_v27 }
 0x470   : > { %v1038_v34 = vsel %vm295_vm0, %v1003_v4, 0.0  ;;  %v1043_v35 = vsel %vm295_vm0, %v1004_v6, 0.0 }
 0x471   : > { %v1039_v36 = vadd.f32 %v1038_v34, %v1037_v2  ;;  %v1044_v37 = vadd.f32 %v1043_v35, %v1042_v3  ;;  %v945_v39 = vpop.permute.xlu0 %944 }
 0x472   : > { %v987_v10 = vmul.f32 %v945_v39, %v1711_v12  ;;  %v988_v11 = vmul.f32 %v945_v39, %v1715_v13 }
 0x473   : > { %v1041_v19 = vadd.f32 %v1040_v29, %v1039_v36  ;;  %v1046_v46 = vadd.f32 %v1045_v41, %v1044_v37 }
 0x474   : > { %v1010_v5 = vsel %vm295_vm0, %v987_v10, 0.0  ;;  %v1015_v50 = vsel %vm295_vm0, %v988_v11, 0.0 }
 0x475   : > { %1053 = vst.msk [vmem:[%s1929_s10 + $0x30] sm:$0xff] %vm295_vm0, %v1041_v19  ;;  %1054 = vst.msk [vmem:[%s1929_s10 + $0x38] sm:$0xff] %vm295_vm0, %v1046_v46  ;;  %v1011_v12 = vadd.f32 %v1010_v5, %v1009_v42  ;;  %v1016_v13 = vadd.f32 %v1015_v50, %v1014_v45  ;;  %v969_v38 = vpop.permute.xlu0 %968 }
 0x476   : > { %v999_v43 = vmul.f32 %v969_v38, %v1718_v14  ;;  %v1000_v63 = vmul.f32 %v969_v38, %v1721_v15 }
 0x477   : > { %1047 = vst.msk [vmem:[%s1929_s10] sm:$0xff] %vm295_vm0, %v1011_v12  ;;  %1048 = vst.msk [vmem:[%s1929_s10 + $0x8] sm:$0xff] %vm295_vm0, %v1016_v13 }
 0x478   : > { %v1030_v58 = vsel %vm295_vm0, %v999_v43, 0.0  ;;  %v1035_v54 = vsel %vm295_vm0, %v1000_v63, 0.0 }
 0x479   : > { %v1031_v14 = vadd.f32 %v1030_v58, %v1029_v56  ;;  %v1036_v15 = vadd.f32 %v1035_v54, %v1034_v48 }
 0x47b   : > { %1051 = vst.msk [vmem:[%s1929_s10 + $0x20] sm:$0xff] %vm295_vm0, %v1031_v14  ;;  %1052 = vst.msk [vmem:[%s1929_s10 + $0x28] sm:$0xff] %vm295_vm0, %v1036_v15 }
 0x47c   : > { %1434 = shalt.err (!%p1431_p7)
}
 0x47d   : > { %s1435_s20 = scalar_lea.hbm %s1976_s26, 1024  ;;  %s1439_s9 = scalar_lea.hbm %s2030_s4, 2048 }
 0x47e   : > { %p1436_p9 = scmp.ne.s32.totalorder %s1976_s26, %s1435_s20  ;;  %p1440_p5 = scmp.lt.u32.totalorder %s1976_s26, %s2030_s4 }
 0x47f   : > { %p1441_p11 = scmp.lt.u32.totalorder %s1439_s9, %s1435_s20  ;;  %p1443_p4 = scmp.lt.u32.totalorder %s1435_s20, %s1976_s26 }
 0x480   : > { %p1437_p2 = pnand %p1436_p9, %p1620_p12 }
 0x481   : > { %p1442_p1 = por %p1441_p11, %p1440_p5 }
 0x482   : > { %p1438_p0 = pneg %p1437_p2 }
 0x483   : > { %p1444_p6 = por %p1443_p4, %p1442_p1 }
 0x485   : > { %p1445_p8 = pnand %p1444_p6, %p1438_p0 }
 0x487   : > { %1448 = shalt.err (!%p1445_p8)
}
 0x488   : > { %s1502_s10 = smov 128   ;;  %s1503_s6 = smov 8  }
 0x489   : > { %1242 = dma.vmem_to_hbm [thread:$0]  (%p1620_p12), %s1978_s5, 1024, %s1976_s26, %s1056_s8, %s1502_s10, %s1502_s10, %s1503_s6  }
 0x48a PF: > { %s1085_s19 = sand.u32 1, %s1479_s15   ;;  %p2045_p10 = scmp.ne.s32.totalorder %s2035_s22, 0 }
 0x48b   : > { %p2046_p13 = scmp.ge.s32.totalorder %s1491_s18, 2  ;;  %s1086_s7 = scalar_lea.sflag [#allocation4], %s1085_s19 }
 0x48d   : > { %p1253_p3 = pnand %p2046_p13, %p2045_p10 }
 0x48f   : > { %1474 = dma.done.wait (!%p1253_p3), %s1086_s7, 1024  }
 0x490   : > { %1476 = vsyncadd (!%p1253_p3), %s1086_s7, 4294966272  ;;  %p18_p7 = scmp.ge.s32.totalorder %s1585_s27, 4   ;;  %s2047_s15 = smov %s1483_s16 }
 0x491   : > { %s2048_s16 = smov %s1487_s17  ;;  %s2049_s17 = smov %s1616_s24 }
 0x492   : > { %s2050_s18 = smov %s1585_s27  ;;  %20 = sbr.rel (!%p18_p7) target bundleno = 6 (0x6), region = 85 }
 0x499   :  { %1091 = vsyncpa [#allocation3], 1 }
 0x49a   :  { %1093 = vsyncpa [#allocation3 + $0x1], 1 }
 0x49b   :  { %1094 = vsyncpa [#allocation6], 1 }
 0x49c   :  { %1095 = vsyncpa [#allocation4], 1 }
 0x49d   :  { %1097 = vsyncpa [#allocation4 + $0x1], 1 }

</bundles_post_ra>
